<compile_context>
chip_gen: v7x
topology: tpu7x:2x2x1
jax: 0.10.0
libtpu: 0.0.40
codegen_flags: <defaults>
</compile_context>

<pallas_src>
import jax
import jax.numpy as jnp
from jax.experimental import pallas as pl
from jax.experimental.pallas import tpu as pltpu


# -----------------------------------------------------------------------------
# Pallas kernel: full solvcat_binary forward, VMEM-resident, gridless, f32.
# -----------------------------------------------------------------------------
def solvcat_kernel(h1_ref, h2_ref, a_ref, x1_ref, w_ref, b_ref, out_ref):
    f32 = jnp.float32
    BN, IN = h1_ref.shape          # B*N nodes per batched graph, IN features
    B = x1_ref.shape[0]            # number of solvent systems
    N = BN // B                    # nodes per molecular graph
    G = 2 * B                      # total graphs (g1 batch + g2 batch)
    H = w_ref.shape[1]             # hidden dim
    C = out_ref.shape[1]           # n_classes

    # ---- static, sublane-aligned views into the packed parameter slabs -----
    r = 0
    w1 = w_ref[r:r + IN, :];      r += IN    # conv1 weight      [IN, H]
    w2 = w_ref[r:r + H, :];       r += H     # conv2 weight      [H, H]
    wc1_h1 = w_ref[r:r + H, :];   r += H     # classify1 rows for hg1 (1/N folded)
    wc1_h2 = w_ref[r:r + H, :];   r += H     # classify1 rows for hg2 (1/N folded)
    wc2 = w_ref[r:r + H, :];      r += H     # classify2 weight  [H, H]
    wc3 = w_ref[r:r + H, :]                  # classify3 weight  (cols padded C->H)

    b1     = b_ref[0:1, :]
    b2     = b_ref[1:2, :]
    wc1_x1 = b_ref[2:3, :]                   # classify1 row multiplying x1
    wc1_x2 = b_ref[3:4, :]                   # classify1 row multiplying x2
    bc1    = b_ref[4:5, :]
    bc2    = b_ref[5:6, :]
    bc3    = b_ref[6:7, :]                   # cols padded C->H

    a = a_ref[...]                           # [G*N, G*N] block-diag D^-1/2 A D^-1/2

    # ---- two GraphConv layers, both branches fused as one tall-M matmul ----
    h = jnp.concatenate([h1_ref[...], h2_ref[...]], axis=0)         # [G*N, IN]
    t = jnp.dot(h, w1, preferred_element_type=f32)                   # X @ W1
    t = jnp.maximum(jnp.dot(a, t, preferred_element_type=f32) + b1, 0.0)
    t = jnp.dot(t, w2, preferred_element_type=f32)                   # X @ W2
    t = jnp.maximum(jnp.dot(a, t, preferred_element_type=f32) + b2, 0.0)

    # ---- dgl.mean_nodes: sum over the node axis (1/N folded into wc1_h*) ---
    hg = jnp.sum(t.reshape(G, N, H), axis=1)                         # [G, H]
    hg1 = hg[0:B, :]
    hg2 = hg[B:G, :]

    x1 = x1_ref[...]                                                 # [B, 1]
    x2 = 1.0 - x1                                                    # solv2_x

    # classify1 on cat((hg1, x1, hg2, x2), axis=1) via split weights:
    #   [hg1|x1|hg2|x2] @ Wc1 == hg1@Wc1[:H] + x1*Wc1[H] + hg2@Wc1[H+1:2H+1] + x2*Wc1[2H+1]
    z = (jnp.dot(hg1, wc1_h1, preferred_element_type=f32)
         + jnp.dot(hg2, wc1_h2, preferred_element_type=f32)
         + x1 * wc1_x1 + x2 * wc1_x2 + bc1)
    o = jnp.maximum(z, 0.0)
    o = jnp.maximum(jnp.dot(o, wc2, preferred_element_type=f32) + bc2, 0.0)
    o = jnp.dot(o, wc3, preferred_element_type=f32) + bc3            # [B, H] (padded)

    out_ref[...] = o[:, :C].astype(out_ref.dtype)                    # single slab store


# -----------------------------------------------------------------------------
# One-time (outside the hot path) parameter packing and graph preparation.
# -----------------------------------------------------------------------------
def pack_params(params, n_nodes, hidden_dim):
    """Pack all weights/biases into two f32 slabs; fold the 1/N mean-pool scale
    into the classify1 hg-rows; pad n_classes columns up to hidden_dim."""
    f32 = jnp.float32
    H = hidden_dim
    inv_n = jnp.float32(1.0 / n_nodes)

    def pad_cols(x):
        c = x.shape[1]
        return x if c == H else jnp.pad(x, ((0, 0), (0, H - c)))

    w_slab = jnp.concatenate([
        params['w1'], params['w2'],
        params['wc1_h1'] * inv_n, params['wc1_h2'] * inv_n,
        params['wc2'], pad_cols(params['wc3']),
    ], axis=0).astype(f32)                                           # [IN+5H, H]
    b_slab = jnp.concatenate([
        params['b1'], params['b2'],
        params['wc1_x1'], params['wc1_x2'],
        params['bc1'], params['bc2'], pad_cols(params['bc3']),
    ], axis=0).astype(f32)                                           # [7, H]
    return w_slab, b_slab


def build_block_diag_adj(a1, a2):
    """a1/a2: [B, N, N] per-graph normalized adjacencies -> [2*B*N, 2*B*N]
    block-diagonal adjacency (one-time graph-structure prep, like DGL batching)."""
    blocks = jnp.concatenate([a1, a2], axis=0)                       # [G, N, N]
    G, N, _ = blocks.shape
    out = jnp.zeros((G * N, G * N), jnp.float32)
    for g in range(G):
        out = out.at[g * N:(g + 1) * N, g * N:(g + 1) * N].set(blocks[g])
    return out


def solvcat_forward(h1, h2, a_bd, solv1x, w_slab, b_slab, n_classes):
    """h1/h2: [B*N, IN] node features of the two batched solvent graphs;
    a_bd: [2*B*N, 2*B*N] block-diag normalized adjacency; solv1x: [B, 1]."""
    B = solv1x.shape[0]
    vmem = pl.BlockSpec(memory_space=pltpu.MemorySpace.VMEM)
    return pl.pallas_call(
        solvcat_kernel,
        out_shape=jax.ShapeDtypeStruct((B, n_classes), jnp.float32),
        in_specs=[vmem] * 6,
        out_specs=vmem,
        compiler_params=pltpu.CompilerParams(vmem_limit_bytes=4 * 1024 * 1024),
    )(h1, h2, a_bd, solv1x, w_slab, b_slab)


# -----------------------------------------------------------------------------
# Glue: synthetic graphs / normalization / pure-f32 JAX reference.
# -----------------------------------------------------------------------------
def sym_normalize(adj):
    deg = adj.sum(axis=1)
    d = 1.0 / jnp.sqrt(jnp.maximum(deg, 1e-12))
    return adj * d[:, None] * d[None, :]


def ring_graph(n):
    """Single-graph adjacency: ring + self-loops."""
    a = jnp.zeros((n, n), jnp.float32)
    for i in range(n):
        j = (i + 1) % n
        a = a.at[i, j].set(1.0).at[j, i].set(1.0).at[i, i].set(1.0)
    return a


def ref_forward(h1, h2, a1, a2, solv1x, p):
    """Pure-f32 reference matching solvcat_binary.forward semantics."""
    B, N, _ = a1.shape

    def gconv(a, x, w, b):          # GraphConv, norm='both': Â (X W) + b
        return jnp.einsum('gij,gjh->gih', a, jnp.einsum('gnf,fh->gnh', x, w)) + b

    def branch(h, a):
        x = h.reshape(B, N, -1)
        t = jax.nn.relu(gconv(a, x, p['w1'], p['b1']))
        t = jax.nn.relu(gconv(a, t, p['w2'], p['b2']))
        return t.mean(axis=1)       # dgl.mean_nodes

    hg1 = branch(h1, a1)
    hg2 = branch(h2, a2)
    x1 = solv1x
    x2 = 1.0 - x1
    wc1_full = jnp.concatenate(
        [p['wc1_h1'], p['wc1_x1'], p['wc1_h2'], p['wc1_x2']], axis=0)   # [2H+2, H]
    hg = jnp.concatenate([hg1, x1, hg2, x2], axis=1)                    # [B, 2H+2]
    o = jax.nn.relu(hg @ wc1_full + p['bc1'])
    o = jax.nn.relu(o @ p['wc2'] + p['bc2'])
    return o @ p['wc3'] + p['bc3']


if __name__ == "__main__":
    B = 2          # number of solvent systems (batch)
    N = 8          # nodes per molecular graph
    IN_DIM = 8
    H = 32
    C = 4          # n_classes

    key = jax.random.PRNGKey(0)
    ks = jax.random.split(key, 16)

    # node features of the two batched solvent graphs
    h1 = jax.random.normal(ks[0], (B * N, IN_DIM), jnp.float32)
    h2 = jax.random.normal(ks[1], (B * N, IN_DIM), jnp.float32)

    # per-graph normalized adjacencies (ring + self-loops), batched as [B, N, N]
    a_single = sym_normalize(ring_graph(N))
    a1 = jnp.tile(a_single[None], (B, 1, 1))
    a2 = jnp.tile(a_single[None], (B, 1, 1))

    # mole fraction of solvent 1 (solvent 2 is 1 - x1, computed in-kernel)
    solv1x = jax.random.uniform(ks[2], (B, 1), jnp.float32, 0.1, 0.9)

    # deterministic synthetic parameters (shapes from module __init__)
    def init(k, shape, scale=0.1):
        return scale * jax.random.normal(k, shape, jnp.float32)

    wc1_full = init(ks[7], (2 * H + 2, H))       # classify1: Linear(2H+2, H)
    params = {
        'w1': init(ks[3], (IN_DIM, H)), 'b1': init(ks[4], (1, H)),
        'w2': init(ks[5], (H, H)),      'b2': init(ks[6], (1, H)),
        'wc1_h1': wc1_full[0:H, :],
        'wc1_x1': wc1_full[H:H + 1, :],
        'wc1_h2': wc1_full[H + 1:2 * H + 1, :],
        'wc1_x2': wc1_full[2 * H + 1:2 * H + 2, :],
        'bc1': init(ks[8], (1, H)),
        'wc2': init(ks[9], (H, H)),  'bc2': init(ks[10], (1, H)),
        'wc3': init(ks[11], (H, C)), 'bc3': init(ks[12], (1, C)),
    }

    # one-time prep (not in the per-call hot path)
    w_slab, b_slab = pack_params(params, n_nodes=N, hidden_dim=H)
    a_bd = build_block_diag_adj(a1, a2)

    out = solvcat_forward(h1, h2, a_bd, solv1x, w_slab, b_slab, C)
    out = jax.block_until_ready(out)

    ref = ref_forward(h1, h2, a1, a2, solv1x, params)
    assert out.shape == (B, C), out.shape
    err = jnp.max(jnp.abs(out - ref))
    assert jnp.allclose(out, ref, atol=2e-3, rtol=2e-3), \
        f"mismatch: max abs err {err}"

    print("KERNEL_OK")
</pallas_src>

<mosaic_0001>
module attributes {stable_mosaic.version = 11 : i64} {
  func.func @solvcat_kernel(%arg0: memref<16x8xf32, #tpu.memory_space<vmem>>, %arg1: memref<16x8xf32, #tpu.memory_space<vmem>>, %arg2: memref<32x32xf32, #tpu.memory_space<vmem>>, %arg3: memref<2x1xf32, #tpu.memory_space<vmem>>, %arg4: memref<168x32xf32, #tpu.memory_space<vmem>>, %arg5: memref<7x32xf32, #tpu.memory_space<vmem>>, %arg6: memref<2x4xf32, #tpu.memory_space<vmem>>) attributes {dimension_semantics = [], scalar_prefetch = 0 : i64, scratch_operands = 0 : i64, tpu.core_type = #tpu.core_type<tc>} {
    %c0 = arith.constant 0 : index
    %c0_0 = arith.constant 0 : index
    %0 = vector.load %arg4[%c0, %c0_0] : memref<168x32xf32, #tpu.memory_space<vmem>>, vector<8x32xf32>
    %c8 = arith.constant 8 : index
    %c0_1 = arith.constant 0 : index
    %1 = vector.load %arg4[%c8, %c0_1] : memref<168x32xf32, #tpu.memory_space<vmem>>, vector<32x32xf32>
    %c40 = arith.constant 40 : index
    %c0_2 = arith.constant 0 : index
    %2 = vector.load %arg4[%c40, %c0_2] : memref<168x32xf32, #tpu.memory_space<vmem>>, vector<32x32xf32>
    %c72 = arith.constant 72 : index
    %c0_3 = arith.constant 0 : index
    %3 = vector.load %arg4[%c72, %c0_3] : memref<168x32xf32, #tpu.memory_space<vmem>>, vector<32x32xf32>
    %c104 = arith.constant 104 : index
    %c0_4 = arith.constant 0 : index
    %4 = vector.load %arg4[%c104, %c0_4] : memref<168x32xf32, #tpu.memory_space<vmem>>, vector<32x32xf32>
    %c136 = arith.constant 136 : index
    %c0_5 = arith.constant 0 : index
    %5 = vector.load %arg4[%c136, %c0_5] : memref<168x32xf32, #tpu.memory_space<vmem>>, vector<32x32xf32>
    %c0_6 = arith.constant 0 : index
    %c0_7 = arith.constant 0 : index
    %6 = vector.load %arg5[%c0_6, %c0_7] : memref<7x32xf32, #tpu.memory_space<vmem>>, vector<1x32xf32>
    %c1 = arith.constant 1 : index
    %c0_8 = arith.constant 0 : index
    %7 = vector.load %arg5[%c1, %c0_8] : memref<7x32xf32, #tpu.memory_space<vmem>>, vector<1x32xf32>
    %c2 = arith.constant 2 : index
    %c0_9 = arith.constant 0 : index
    %8 = vector.load %arg5[%c2, %c0_9] : memref<7x32xf32, #tpu.memory_space<vmem>>, vector<1x32xf32>
    %c3 = arith.constant 3 : index
    %c0_10 = arith.constant 0 : index
    %9 = vector.load %arg5[%c3, %c0_10] : memref<7x32xf32, #tpu.memory_space<vmem>>, vector<1x32xf32>
    %c4 = arith.constant 4 : index
    %c0_11 = arith.constant 0 : index
    %10 = vector.load %arg5[%c4, %c0_11] : memref<7x32xf32, #tpu.memory_space<vmem>>, vector<1x32xf32>
    %c5 = arith.constant 5 : index
    %c0_12 = arith.constant 0 : index
    %11 = vector.load %arg5[%c5, %c0_12] : memref<7x32xf32, #tpu.memory_space<vmem>>, vector<1x32xf32>
    %c6 = arith.constant 6 : index
    %c0_13 = arith.constant 0 : index
    %12 = vector.load %arg5[%c6, %c0_13] : memref<7x32xf32, #tpu.memory_space<vmem>>, vector<1x32xf32>
    %c0_14 = arith.constant 0 : index
    %c0_15 = arith.constant 0 : index
    %13 = vector.load %arg2[%c0_14, %c0_15] : memref<32x32xf32, #tpu.memory_space<vmem>>, vector<32x32xf32>
    %c0_16 = arith.constant 0 : index
    %c0_17 = arith.constant 0 : index
    %14 = vector.load %arg0[%c0_16, %c0_17] : memref<16x8xf32, #tpu.memory_space<vmem>>, vector<16x8xf32>
    %c0_18 = arith.constant 0 : index
    %c0_19 = arith.constant 0 : index
    %15 = vector.load %arg1[%c0_18, %c0_19] : memref<16x8xf32, #tpu.memory_space<vmem>>, vector<16x8xf32>
    %16 = tpu.concatenate %14, %15 in 0 : vector<16x8xf32>, vector<16x8xf32> -> vector<32x8xf32>
    %cst = arith.constant dense<0.000000e+00> : vector<32x32xf32>
    %17 = tpu.matmul %16, %0, %cst {dimension_numbers = #tpu.dot_dimension_numbers<[1], [0], [0], [1], [0, 0, 1, 1], [], []>} : vector<32x8xf32>, vector<8x32xf32>, vector<32x32xf32> -> vector<32x32xf32>
    %cst_20 = arith.constant dense<0.000000e+00> : vector<32x32xf32>
    %18 = tpu.matmul %13, %17, %cst_20 {dimension_numbers = #tpu.dot_dimension_numbers<[1], [0], [0], [1], [0, 0, 1, 1], [], []>} : vector<32x32xf32>, vector<32x32xf32>, vector<32x32xf32> -> vector<32x32xf32>
    %19 = vector.broadcast %6 : vector<1x32xf32> to vector<32x32xf32>
    %20 = arith.addf %18, %19 : vector<32x32xf32>
    %cst_21 = arith.constant 0.000000e+00 : f32
    %21 = vector.broadcast %cst_21 : f32 to vector<32x32xf32>
    %22 = arith.maximumf %20, %21 : vector<32x32xf32>
    %cst_22 = arith.constant dense<0.000000e+00> : vector<32x32xf32>
    %23 = tpu.matmul %22, %1, %cst_22 {dimension_numbers = #tpu.dot_dimension_numbers<[1], [0], [0], [1], [0, 0, 1, 1], [], []>} : vector<32x32xf32>, vector<32x32xf32>, vector<32x32xf32> -> vector<32x32xf32>
    %cst_23 = arith.constant dense<0.000000e+00> : vector<32x32xf32>
    %24 = tpu.matmul %13, %23, %cst_23 {dimension_numbers = #tpu.dot_dimension_numbers<[1], [0], [0], [1], [0, 0, 1, 1], [], []>} : vector<32x32xf32>, vector<32x32xf32>, vector<32x32xf32> -> vector<32x32xf32>
    %25 = vector.broadcast %7 : vector<1x32xf32> to vector<32x32xf32>
    %26 = arith.addf %24, %25 : vector<32x32xf32>
    %cst_24 = arith.constant 0.000000e+00 : f32
    %27 = vector.broadcast %cst_24 : f32 to vector<32x32xf32>
    %28 = arith.maximumf %26, %27 : vector<32x32xf32>
    %29 = vector.shape_cast %28 : vector<32x32xf32> to vector<4x8x32xf32>
    %cst_25 = arith.constant dense<0.000000e+00> : vector<4x32xf32>
    %30 = vector.multi_reduction <add>, %29, %cst_25 [1] : vector<4x8x32xf32> to vector<4x32xf32>
    %31 = vector.extract_strided_slice %30 {offsets = [0, 0], sizes = [2, 32], strides = [1, 1]} : vector<4x32xf32> to vector<2x32xf32>
    %32 = vector.extract_strided_slice %30 {offsets = [2, 0], sizes = [2, 32], strides = [1, 1]} : vector<4x32xf32> to vector<2x32xf32>
    %c0_26 = arith.constant 0 : index
    %c0_27 = arith.constant 0 : index
    %33 = vector.load %arg3[%c0_26, %c0_27] : memref<2x1xf32, #tpu.memory_space<vmem>>, vector<2x1xf32>
    %cst_28 = arith.constant 1.000000e+00 : f32
    %34 = vector.broadcast %cst_28 : f32 to vector<2x1xf32>
    %35 = arith.subf %34, %33 : vector<2x1xf32>
    %cst_29 = arith.constant dense<0.000000e+00> : vector<2x32xf32>
    %36 = tpu.matmul %31, %2, %cst_29 {dimension_numbers = #tpu.dot_dimension_numbers<[1], [0], [0], [1], [0, 0, 1, 1], [], []>} : vector<2x32xf32>, vector<32x32xf32>, vector<2x32xf32> -> vector<2x32xf32>
    %cst_30 = arith.constant dense<0.000000e+00> : vector<2x32xf32>
    %37 = tpu.matmul %32, %3, %cst_30 {dimension_numbers = #tpu.dot_dimension_numbers<[1], [0], [0], [1], [0, 0, 1, 1], [], []>} : vector<2x32xf32>, vector<32x32xf32>, vector<2x32xf32> -> vector<2x32xf32>
    %38 = arith.addf %36, %37 : vector<2x32xf32>
    %39 = vector.broadcast %33 : vector<2x1xf32> to vector<2x32xf32>
    %40 = vector.broadcast %8 : vector<1x32xf32> to vector<2x32xf32>
    %41 = arith.mulf %39, %40 : vector<2x32xf32>
    %42 = arith.addf %38, %41 : vector<2x32xf32>
    %43 = vector.broadcast %35 : vector<2x1xf32> to vector<2x32xf32>
    %44 = vector.broadcast %9 : vector<1x32xf32> to vector<2x32xf32>
    %45 = arith.mulf %43, %44 : vector<2x32xf32>
    %46 = arith.addf %42, %45 : vector<2x32xf32>
    %47 = vector.broadcast %10 : vector<1x32xf32> to vector<2x32xf32>
    %48 = arith.addf %46, %47 : vector<2x32xf32>
    %cst_31 = arith.constant 0.000000e+00 : f32
    %49 = vector.broadcast %cst_31 : f32 to vector<2x32xf32>
    %50 = arith.maximumf %48, %49 : vector<2x32xf32>
    %cst_32 = arith.constant dense<0.000000e+00> : vector<2x32xf32>
    %51 = tpu.matmul %50, %4, %cst_32 {dimension_numbers = #tpu.dot_dimension_numbers<[1], [0], [0], [1], [0, 0, 1, 1], [], []>} : vector<2x32xf32>, vector<32x32xf32>, vector<2x32xf32> -> vector<2x32xf32>
    %52 = vector.broadcast %11 : vector<1x32xf32> to vector<2x32xf32>
    %53 = arith.addf %51, %52 : vector<2x32xf32>
    %cst_33 = arith.constant 0.000000e+00 : f32
    %54 = vector.broadcast %cst_33 : f32 to vector<2x32xf32>
    %55 = arith.maximumf %53, %54 : vector<2x32xf32>
    %cst_34 = arith.constant dense<0.000000e+00> : vector<2x32xf32>
    %56 = tpu.matmul %55, %5, %cst_34 {dimension_numbers = #tpu.dot_dimension_numbers<[1], [0], [0], [1], [0, 0, 1, 1], [], []>} : vector<2x32xf32>, vector<32x32xf32>, vector<2x32xf32> -> vector<2x32xf32>
    %57 = vector.broadcast %12 : vector<1x32xf32> to vector<2x32xf32>
    %58 = arith.addf %56, %57 : vector<2x32xf32>
    %59 = vector.extract_strided_slice %58 {offsets = [0, 0], sizes = [2, 4], strides = [1, 1]} : vector<2x32xf32> to vector<2x4xf32>
    %c0_35 = arith.constant 0 : index
    %c0_36 = arith.constant 0 : index
    %60 = vector.load %arg6[%c0_35, %c0_36] : memref<2x4xf32, #tpu.memory_space<vmem>>, vector<2x4xf32>
    tpu.vector_store %arg6[%c0_35, %c0_36], %59 {strides = array<i32>} : memref<2x4xf32, #tpu.memory_space<vmem>>, vector<2x4xf32>,
    return
  }
}

</mosaic_0001>

<bundles_post_ra>
// kernel: tpu_custom_call.1
= control target key start
LH: loop header
LB: loop body
LE: loop exit
PB: predicated region body
PF: predicated region fallthrough
CT: control target
= control target key end

     0   :  { %vm60_vm0 = vcmask 64512   ;;  %s1277_s0 = inlined_call_operand.vmem [shape: f32[16,8], index: 0, kind: input, shape index: {}]   ;;  %s1278_s1 = inlined_call_operand.vmem [shape: f32[16,8], index: 1, kind: input, shape index: {}]   ;;  %s1279_s2 = inlined_call_operand.vmem [shape: f32[32,32], index: 2, kind: input, shape index: {}]   ;;  %s1280_s3 = inlined_call_operand.vmem [shape: f32[2,1], index: 3, kind: input, shape index: {}]   ;;  %s1281_s4 = inlined_call_operand.vmem [shape: f32[168,32], index: 4, kind: input, shape index: {}]   ;;  %s1282_s5 = inlined_call_operand.vmem [shape: f32[7,32], index: 5, kind: input, shape index: {}]   ;;  %s1283_s6 = inlined_call_operand.hbm [shape: f32[2,4], index: 6, kind: output, shape index: {}]  }
   0x1   :  { %v24_v0 = vld [vmem:[%s1281_s4] sm:$0xff]  ;;  %v57_v2 = vld [vmem:[%s1277_s0 + $0x8] sm:$0xff] }
   0x2   :  { %v56_v1 = vld [vmem:[%s1277_s0] sm:$0xff]  ;;  %910 = vmatprep.subr.mxu0 %v24_v0 }
   0x3   :  { %912 = vmatprep.mubr.msk.f32.mxu0 %vm60_vm0, %v56_v1  ;;  %v58_v3 = vld [vmem:[%s1278_s1] sm:$0xff] }
   0x4   :  { %11 = vsyncpa [#allocation3], 0  ;;  %911 = vmatpush3.msra.mxu0 %v24_v0  ;;  %v59_v4 = vld [vmem:[%s1278_s1 + $0x8] sm:$0xff]  ;;  %v52_v5 = vld [vmem:[%s1279_s2] sm:$0xff]  ;;  %vm162_vm1 = vcmask 261120   ;;  %v1082_v43 = vmov 0.0|0.0  }
   0x5   :  { %913 = vmatmul.mubr.msk.f32.vlgmr.msra.gmra.mrb[0].mxu0 %vm60_vm0, %v57_v2  ;;  %926 = vmatprep.mubr.msk.f32.mxu1 %vm162_vm1, %v52_v5  ;;  %v25_v6 = vld [vmem:[%s1281_s4 + $0x8] sm:$0xff]  ;;  %v26_v7 = vld [vmem:[%s1281_s4 + $0x10] sm:$0xff]  ;;  %v55_v17 = vld [vmem:[%s1279_s2 + $0x18] sm:$0xff]  ;;  %vm1083_vm2 = vmmov 0   ;;  %v1084_v52 = vmov 0.0   ;;  %v1085_v55 = vmov 0  }
   0x6   :  { %915 = vmatprep.mubr.msk.f32.mxu0 %vm60_vm0, %v58_v3  ;;  %v1012_v8 = vpack.c.bf16 %v26_v7, %v25_v6  ;;  %v53_v15 = vld [vmem:[%s1279_s2 + $0x8] sm:$0xff]  ;;  %v54_v16 = vld [vmem:[%s1279_s2 + $0x10] sm:$0xff]  ;;  %v27_v18 = vld [vmem:[%s1281_s4 + $0x18] sm:$0xff]  ;;  %1057 = vset.pattern.permute.xlu0 %v1085_v55  ;;  %vm486_vm3 = vcmask 1041409   ;;  %s1086_s14 = smov [#allocation2]   ;;  %vm818_vm4 = vcmask 25600  }
   0x7   :  { %v28_v19 = vld [vmem:[%s1281_s4 + $0x20] sm:$0xff]  ;;  %v29_v40 = vld [vmem:[%s1281_s4 + $0x28] sm:$0xff]  ;;  %v30_v41 = vld [vmem:[%s1281_s4 + $0x30] sm:$0xff]  ;;  %s826_s15 = sshll.u32 %s1086_s14, 4  ;;  %s827_s15 = int_to_ptr.vmem [resolvable:$true] %s826_s15 }
   0x8   :  { %1013 = vmatprep.subr.bf16.mxu0 %v1012_v8  ;;  %v1016_v20 = vpack.c.bf16 %v28_v19, %v27_v18  ;;  %v838_v21 = vld [vmem:[%s1282_s5] ss:$0 sm:$0xff]  ;;  %v1035_v42 = vpack.c.bf16 %v30_v41, %v29_v40  ;;  %v33_v44 = vld [vmem:[%s1281_s4 + $0x48] sm:$0xff]  ;;  %v34_v45 = vld [vmem:[%s1281_s4 + $0x50] sm:$0xff]  ;;  %p1063_p1 = scmp.lt.s32.totalorder %s827_s15, %s827_s15 }
   0x9   :  { %916 = vmatmul.mubr.msk.f32.gmra.mrb[2].mxu0 %vm60_vm0, %v59_v4  ;;  %v31_v46 = vld [vmem:[%s1281_s4 + $0x38] sm:$0xff]  ;;  %v1029_v47 = vpack.c.bf16 %v34_v45, %v33_v44  ;;  %v32_v48 = vld [vmem:[%s1281_s4 + $0x40] sm:$0xff]  ;;  %v42_v44 = vld [vmem:[%s1281_s4 + $0x90] sm:$0xff] }
   0xa   :  { %1015 = vmatpush3.bf16.msra.mxu0 %v1012_v8  ;;  %v1038_v49 = vpack.c.bf16 %v32_v48, %v31_v46  ;;  %v35_v50 = vld [vmem:[%s1281_s4 + $0x58] sm:$0xff]  ;;  %v36_v51 = vld [vmem:[%s1281_s4 + $0x60] sm:$0xff] }
   0xb   :  { %1017 = vmatprep.subr.bf16.mxu0 %v1016_v20  ;;  %v1032_v53 = vpack.c.bf16 %v36_v51, %v35_v50  ;;  %v482_v54 = vld [vmem:[%s1280_s3] sm:$0x3]  ;;  %v855_v51 = vld [vmem:[%s1282_s5 + $0x3] ss:$0 sm:$0xff] }
   0xc   :  { %637 = vperm.xlu0 %1057, %v482_v54   ;;  %v483_v56 = vsub.f32 1.0, %v482_v54  ;;  %v847_v57 = vld [vmem:[%s1282_s5 + $0x1] ss:$0 sm:$0xff] }
   0xd   :  { %v40_v40 = vld [vmem:[%s1281_s4 + $0x80] sm:$0xff] }
   0xe   :  { %1019 = vmatpush3.bf16.msra.mxu0 %v1016_v20 }
   0xf   :  { %1028 = vmatprep.subr.bf16.mxu0 %v1082_v43 }
  0x10   :  { %648 = vperm.xlu0 %1057, %v483_v56  }
  0x8b   :  { %v638_v46 = vpop.permute.xlu0 %637 }
  0x8f   :  { %v649_v50 = vpop.permute.xlu0 %648 }
  0x90   :  { %v655_v56 = vmul.f32 %v855_v51, %v649_v50 }
  0xd8   :  { %v914_v9 = vpop.f32.mrb[0].mxu0 }
  0xd9   :  { %v139_v10 = vpop.f32.mrb[1].mxu0 }
  0xda   :  { %v1004_v11 = vpack.c.bf16 %v914_v9, %v139_v10 }
  0xdc   :  { %v917_v12 = vpop.f32.mrb[2].mxu0  ;;  %1005 = vmatprep.subr.bf16.mxu1 %v1004_v11 }
  0xdd   :  { %v149_v13 = vpop.f32.mrb[3].mxu0  ;;  %1007 = vmatpush3.bf16.msra.mxu1 %v1004_v11 }
  0xde   :  { %v1008_v14 = vpack.c.bf16 %v917_v12, %v149_v13 }
  0xe0   :  { %1009 = vmatprep.subr.bf16.mxu1 %v1008_v14 }
  0xe1   :  { %1011 = vmatpush3.bf16.msra.mxu1 %v1008_v14 }
  0xe4   :  { %927 = vmatmul.mubr.msk.f32.vlgmr.msra.gmra.mrb[0].mxu1 %vm162_vm1, %v53_v15 }
  0xe5   :  { %929 = vmatprep.mubr.msk.f32.mxu1 %vm162_vm1, %v54_v16 }
  0xe8   :  { %930 = vmatmul.mubr.msk.f32.gmra.mrb[2].mxu1 %vm162_vm1, %v55_v17 }
  0xe9   :  { %954 = vmatprep.mubr.msk.f32.mxu1 %vm162_vm1, %v52_v5 }
 0x1b7   :  { %v928_v22 = vpop.f32.mrb[0].mxu1 }
 0x1b8   :  { %v247_v23 = vadd.f32 %v928_v22, %v838_v21  ;;  %v241_v24 = vpop.f32.mrb[1].mxu1 }
 0x1b9   :  { %v242_v25 = vadd.f32 %v838_v21, %v241_v24 }
 0x1ba   :  { %v261_v28 = vmax.f32 %v247_v23, 0.0 }
 0x1bb   :  { %v260_v26 = vmax.f32 %v242_v25, 0.0  ;;  %v931_v27 = vpop.f32.mrb[2].mxu1 }
 0x1bc   :  { %v257_v29 = vadd.f32 %v931_v27, %v838_v21  ;;  %v251_v30 = vpop.f32.mrb[3].mxu1 }
 0x1bd   :  { %v252_v31 = vadd.f32 %v838_v21, %v251_v30  ;;  %940 = vmatprep.mubr.msk.f32.mxu0 %vm162_vm1, %v260_v26 }
 0x1be   :  { %941 = vmatmul.mubr.msk.f32.vlgmr.msra.gmra.mrb[4].mxu0 %vm162_vm1, %v261_v28  ;;  %v263_v33 = vmax.f32 %v257_v29, 0.0 }
 0x1bf   :  { %v262_v32 = vmax.f32 %v252_v31, 0.0  ;;  %1030 = vmatpush3.bf16.msra.mxu0 %v1029_v47 }
 0x1c0   :  { %1031 = vmatprep.subr.bf16.mxu0 %v1082_v43 }
 0x1c1   :  { %943 = vmatprep.mubr.msk.f32.mxu0 %vm162_vm1, %v262_v32 }
 0x1c2   :  { %944 = vmatmul.mubr.msk.f32.gmra.mrb[6].mxu0 %vm162_vm1, %v263_v33 }
 0x1c3   :  { %968 = vmatprep.mubr.msk.f32.mxu0 %vm1083_vm2, %v1084_v52  ;;  %1033 = vmatpush3.bf16.msra.mxu0 %v1032_v53 }
 0x1c4   :  { %1040 = vmatprep.subr.bf16.mxu0 %v1082_v43 }
 0x291   :  { %v942_v34 = vpop.f32.mrb[4].mxu0 }
 0x292   :  { %v342_v35 = vpop.f32.mrb[5].mxu0 }
 0x293   :  { %v1020_v36 = vpack.c.bf16 %v942_v34, %v342_v35 }
 0x295   :  { %v945_v37 = vpop.f32.mrb[6].mxu0  ;;  %1021 = vmatprep.subr.bf16.mxu1 %v1020_v36 }
 0x296   :  { %v352_v38 = vpop.f32.mrb[7].mxu0  ;;  %1023 = vmatpush3.bf16.msra.mxu1 %v1020_v36  ;;  %v37_v36 = vld [vmem:[%s1281_s4 + $0x68] sm:$0xff] }
 0x297   :  { %v1024_v39 = vpack.c.bf16 %v945_v37, %v352_v38  ;;  %v38_v37 = vld [vmem:[%s1281_s4 + $0x70] sm:$0xff] }
 0x298   :  { %v1041_v38 = vpack.c.bf16 %v38_v37, %v37_v36 }
 0x299   :  { %1025 = vmatprep.subr.bf16.mxu1 %v1024_v39 }
 0x29a   :  { %1027 = vmatpush3.bf16.msra.mxu1 %v1024_v39  ;;  %v39_v39 = vld [vmem:[%s1281_s4 + $0x78] sm:$0xff] }
 0x29b   :  { %1034 = vmatprep.subr.bf16.mxu1 %v1082_v43  ;;  %v1044_v41 = vpack.c.bf16 %v40_v40, %v39_v39 }
 0x29d   :  { %955 = vmatmul.mubr.msk.f32.vlgmr.msra.gmra.mrb[4].mxu1 %vm162_vm1, %v53_v15 }
 0x29e   :  { %957 = vmatprep.mubr.msk.f32.mxu1 %vm162_vm1, %v54_v16  ;;  %1036 = vmatpush3.bf16.msra.mxu1 %v1035_v42  ;;  %v41_v42 = vld [vmem:[%s1281_s4 + $0x88] sm:$0xff] }
 0x29f   :  { %1037 = vmatprep.subr.bf16.mxu1 %v1082_v43  ;;  %v1047_v45 = vpack.c.bf16 %v42_v44, %v41_v42 }
 0x2a1   :  { %958 = vmatmul.mubr.msk.f32.gmra.mrb[6].mxu1 %vm162_vm1, %v55_v17 }
 0x2a2   :  { %1039 = vmatpush3.bf16.msra.mxu1 %v1038_v49  ;;  %979 = vmatprep.mubr.msk.f32.mxu1 %vm1083_vm2, %v1084_v52  ;;  %v854_v49 = vld [vmem:[%s1282_s5 + $0x2] ss:$0 sm:$0xff] }
 0x2a3   :  { %1046 = vmatprep.subr.bf16.mxu1 %v1082_v43  ;;  %v644_v53 = vmul.f32 %v854_v49, %v638_v46 }
 0x370   :  { %v956_v58 = vpop.f32.mrb[4].mxu1 }
 0x371   :  { %v437_v59 = vadd.f32 %v956_v58, %v847_v57  ;;  %v431_v60 = vpop.f32.mrb[5].mxu1 }
 0x372   :  { %v432_v61 = vadd.f32 %v847_v57, %v431_v60 }
 0x373   :  { %v451_v62 = vmax.f32 %v437_v59, 0.0 }
 0x374   :  { %v450_v63 = vmax.f32 %v432_v61, 0.0  ;;  %v959_v0 = vpop.f32.mrb[6].mxu1  ;;  %v43_v61 = vld [vmem:[%s1281_s4 + $0x98] sm:$0xff] }
 0x375   :  { %v461_v1 = vsel %vm162_vm1, %v451_v62, 0.0  ;;  %v447_v2 = vadd.f32 %v959_v0, %v847_v57  ;;  %v441_v3 = vpop.f32.mrb[7].mxu1  ;;  %v44_v62 = vld [vmem:[%s1281_s4 + $0xa0] sm:$0xff]  ;;  %s1058_s4 = scalar_lea.vmem %s827_s15, 32 }
 0x376   :  { %v462_v4 = vrot.slane %v461_v1, 4  ;;  %v454_v5 = vsel %vm162_vm1, %v450_v63, 0.0  ;;  %v442_v6 = vadd.f32 %v847_v57, %v441_v3  ;;  %v1050_v63 = vpack.c.bf16 %v44_v62, %v43_v61  ;;  %v857_v0 = vld [vmem:[%s1282_s5 + $0x5] ss:$0 sm:$0xff]  ;;  %p1059_p0 = scmp.ne.s32.totalorder %s827_s15, %s1058_s4  ;;  %p1064_p2 = scmp.lt.s32.totalorder %s1058_s4, %s1058_s4 }
 0x377   :  { %v455_v7 = vrot.slane %v454_v5, 4  ;;  %v453_v8 = vmax.f32 %v447_v2, 0.0 }
 0x378   :  { %v463_v9 = vadd.f32 %v462_v4, %v461_v1  ;;  %v452_v10 = vmax.f32 %v442_v6, 0.0  ;;  %p1065_p3 = por %p1064_p2, %p1063_p1 }
 0x379   :  { %v456_v11 = vadd.f32 %v455_v7, %v454_v5  ;;  %v475_v12 = vsel %vm162_vm1, %v453_v8, 0.0  ;;  %v859_v5 = vld [vmem:[%s1282_s5 + $0x6] ss:$0 sm:$0xff] }
 0x37a   :  { %v464_v13 = vrot.slane %v463_v9, 2  ;;  %v476_v14 = vrot.slane %v475_v12, 4  ;;  %v468_v15 = vsel %vm162_vm1, %v452_v10, 0.0  ;;  %p1066_p4 = pnand %p1065_p3, %p1059_p0 }
 0x37b   :  { %v457_v16 = vrot.slane %v456_v11, 2  ;;  %v469_v17 = vrot.slane %v468_v15, 4 }
 0x37c   :  { %v465_v18 = vadd.f32 %v464_v13, %v463_v9  ;;  %v477_v19 = vadd.f32 %v476_v14, %v475_v12 }
 0x37d   :  { %v458_v20 = vadd.f32 %v457_v16, %v456_v11  ;;  %v470_v21 = vadd.f32 %v469_v17, %v468_v15 }
 0x37e   :  { %v466_v22 = vrot.slane %v465_v18, 1  ;;  %v478_v23 = vrot.slane %v477_v19, 2 }
 0x37f   :  { %v459_v24 = vrot.slane %v458_v20, 1  ;;  %v471_v25 = vrot.slane %v470_v21, 2 }
 0x380   :  { %v467_v26 = vadd.f32 %v466_v22, %v465_v18  ;;  %v479_v27 = vadd.f32 %v478_v23, %v477_v19 }
 0x381   :  { %v460_v28 = vadd.f32 %v459_v24, %v458_v20  ;;  %v472_v29 = vadd.f32 %v471_v25, %v470_v21 }
 0x382   :  { %v480_v30 = vrot.slane %v479_v27, 1 }
 0x383   :  { %v473_v31 = vrot.slane %v472_v29, 1  ;;  %v562_v32 = vsel %vm486_vm3, %v467_v26, %v460_v28 }
 0x384   :  { %v481_v33 = vadd.f32 %v480_v30, %v479_v27  ;;  %980 = vmatmul.mubr.msk.f32.vlgmr.msra.gmra.mrb[8].mxu1 %vm162_vm1, %v562_v32 }
 0x385   :  { %v474_v34 = vadd.f32 %v473_v31, %v472_v29  ;;  %1001 = vmatprep.mubr.msk.f32.mxu1 %vm1083_vm2, %v1084_v52  ;;  %1048 = vmatpush3.bf16.msra.mxu1 %v1047_v45 }
 0x386   :  { %1049 = vmatprep.subr.bf16.mxu1 %v1082_v43 }
 0x387   :  { %v487_v35 = vsel %vm486_vm3, %v481_v33, %v474_v34 }
 0x388   :  { %969 = vmatmul.mubr.msk.f32.vlgmr.msra.gmra.mrb[8].mxu0 %vm162_vm1, %v487_v35 }
 0x389   :  { %990 = vmatprep.mubr.msk.f32.mxu0 %vm1083_vm2, %v1084_v52  ;;  %1042 = vmatpush3.bf16.msra.mxu0 %v1041_v38 }
 0x38a   :  { %1043 = vmatprep.subr.bf16.mxu0 %v1082_v43  ;;  %v856_v43 = vld [vmem:[%s1282_s5 + $0x4] ss:$0 sm:$0xff]  ;;  %1051 = vmatpush3.bf16.msra.mxu1 %v1050_v63 }
 0x38d   :  { %1045 = vmatpush3.bf16.msra.mxu0 %v1044_v41 }
 0x457   :  { %v631_v47 = vpop.f32.mrb[8].mxu1 }
 0x458   :  { %v981_v48 = vpop.f32.mrb[9].mxu1 }
 0x45b   :  { %v556_v52 = vpop.f32.mrb[8].mxu0 }
 0x45c   :  { %v632_v54 = vadd.f32 %v631_v47, %v556_v52  ;;  %v970_v55 = vpop.f32.mrb[9].mxu0 }
 0x45e   :  { %v645_v57 = vadd.f32 %v644_v53, %v632_v54 }
 0x460   :  { %v656_v58 = vadd.f32 %v655_v56, %v645_v57 }
 0x462   :  { %v661_v59 = vadd.f32 %v856_v43, %v656_v58 }
 0x464   :  { %v662_v60 = vmax.f32 %v661_v59, 0.0 }
 0x466   :  { %991 = vmatmul.mubr.msk.f32.vlgmr.msra.gmra.mrb[10].mxu0 %vm162_vm1, %v662_v60 }
 0x539   :  { %v736_v1 = vpop.f32.mrb[10].mxu0 }
 0x53a   :  { %v737_v2 = vadd.f32 %v857_v0, %v736_v1  ;;  %v992_v3 = vpop.f32.mrb[11].mxu0 }
 0x53c   :  { %v740_v4 = vmax.f32 %v737_v2, 0.0 }
 0x53e   :  { %1002 = vmatmul.mubr.msk.f32.vlgmr.msra.gmra.mrb[10].mxu1 %vm162_vm1, %v740_v4 }
 0x611   :  { %v814_v6 = vpop.f32.mrb[10].mxu1 }
 0x612   :  { %v815_v7 = vadd.f32 %v859_v5, %v814_v6  ;;  %v1003_v8 = vpop.f32.mrb[11].mxu1 }
 0x614   :  { %819 = vst.msk [vmem:[#allocation2] sm:$0x3] %vm818_vm4, %v815_v7 }
 0x615   :  { %1069 = shalt.err (!%p1066_p4)
}
 0x616   :  { %s1070_s17 = scalar_lea.hbm %s1283_s6, 32 }
 0x617   :  { %p1071_p5 = scmp.ne.s32.totalorder %s1283_s6, %s1070_s17  ;;  %p1074_p6 = scmp.lt.u32.totalorder %s1070_s17, %s1283_s6 }
 0x619   :  { %p1076_p7 = pnand %p1074_p6, %p1071_p5 }
 0x61b   :  { %1079 = shalt.err (!%p1076_p7)
}
 0x61c   :  { %829 = dma.vmem_to_hbm [thread:$0]  %s827_s15, 32, %s1283_s6, [#allocation3]  }
 0x61d   :  { %1080 = dma.done.wait [#allocation3], 32  }
 0x61e   :  { %1081 = vsyncadd [#allocation3], 4294967264 }
 0x61f   :  { %833 = vsyncpa [#allocation3], 1 }

</bundles_post_ra>
